<compile_context>
chip_gen: v7x
topology: tpu7x:2x2x1
jax: 0.10.0
libtpu: 0.0.40
codegen_flags: <defaults>
</compile_context>

<pallas_src>
import jax
import jax.numpy as jnp
from jax.experimental import pallas as pl
from jax.experimental.pallas import tpu as pltpu


def _patch_prompter_kernel(x_ref, p_ref, o_ref):
    # Elementwise add; p_ref is (1, nb) and broadcasts over the (rb, nb) x tile.
    o_ref[...] = x_ref[...] + p_ref[...]


def _pick_blocks(B, N, itemsize, target_bytes=4 << 20):
    """Pick (row_block, col_block) for the flattened (B, N) layout.

    Constraints honored:
      * row block is a multiple of 8 or equals the full B (sublane rule),
      * col block is a multiple of 128 or equals the full N (lane rule),
      * ~target_bytes per block so double-buffered in+out stays far below the
        32 MiB default scoped VMEM limit (safe on v7x's 64 MiB VMEM too).
    """
    # Row (sublane) block: a divisor of B that is a multiple of 8, else full B.
    mult8_divs = [d for d in range(8, B + 1, 8) if B % d == 0]
    if mult8_divs:
        fitting = [d for d in mult8_divs if d * N * itemsize <= target_bytes]
        rb = max(fitting) if fitting else min(mult8_divs)
    else:
        rb = B
    # Column (lane) block: full N if it fits; otherwise halve while the result
    # stays a multiple of 128 (halving a power-of-two factor keeps N % nb == 0).
    nb = N
    if N % 128 == 0:
        while rb * nb * itemsize > target_bytes and nb % 256 == 0:
            nb //= 2
    # Keep at least 2 grid steps so v7x can shard work across both TensorCores.
    if (B // rb) * (N // nb) < 2 and nb % 256 == 0:
        nb //= 2
    return rb, nb


def patch_prompter(x, prompt):
    """x: (B, C, H, W); prompt: (1, C, H, W). Returns x + prompt (broadcast over B)."""
    B, C, H, W = x.shape
    assert prompt.shape == (1, C, H, W)
    N = C * H * W

    # Lane-dense 2D views (pure layout plumbing, no compute).
    xf = x.reshape(B, N)
    pf = prompt.reshape(1, N)

    itemsize = jnp.dtype(x.dtype).itemsize
    rb, nb = _pick_blocks(B, N, itemsize)
    gj, gi = N // nb, B // rb  # column axis outer -> prompt tile resident across inner axis

    # TODO(synk): if the caller never reuses x, input_output_aliases={0: 0} would
    # write the result in place and drop the extra output allocation.
    out = pl.pallas_call(
        _patch_prompter_kernel,
        out_shape=jax.ShapeDtypeStruct((B, N), x.dtype),
        grid_spec=pltpu.PrefetchScalarGridSpec(
            num_scalar_prefetch=0,
            grid=(gj, gi),
            in_specs=[
                # Streamed x tile: (rb, nb), lane dim a large multiple of 128.
                pl.BlockSpec((rb, nb), lambda j, i: (i, j)),
                # Prompt tile: constant across the inner (batch) axis -> reused
                # from VMEM; only changes when the column block changes.
                pl.BlockSpec((1, nb), lambda j, i: (0, j)),
            ],
            out_specs=pl.BlockSpec((rb, nb), lambda j, i: (i, j)),
        ),
        compiler_params=pltpu.CompilerParams(
            dimension_semantics=("parallel", "parallel"),
        ),
    )(xf, pf)

    return out.reshape(B, C, H, W)


if __name__ == "__main__":
    key = jax.random.PRNGKey(0)
    k_x, k_p = jax.random.split(key)

    B, C, H, W = 2, 3, 16, 16  # image_size = (16, 16); module fixes C = 3
    x = jax.random.normal(k_x, (B, C, H, W), dtype=jnp.float32)
    # Deterministic "parameter" init, mirroring torch.randn([1, 3, H, W]).
    prompt = jax.random.normal(k_p, (1, C, H, W), dtype=jnp.float32)

    out = patch_prompter(x, prompt)
    jax.block_until_ready(out)

    # Correctness check against plain-JAX reference (broadcast add).
    ref = x + prompt
    assert out.shape == (B, C, H, W)
    assert jnp.allclose(out, ref, atol=1e-6, rtol=1e-6)

    print("KERNEL_OK")
</pallas_src>

<mosaic_0001>
module attributes {stable_mosaic.version = 11 : i64} {
  func.func @_patch_prompter_kernel(%arg0: i32, %arg1: i32, %arg2: memref<2x384xf32, #tpu.memory_space<vmem>>, %arg3: memref<1x384xf32, #tpu.memory_space<vmem>>, %arg4: memref<2x384xf32, #tpu.memory_space<vmem>>) attributes {dimension_semantics = [#tpu.dimension_semantics<parallel>, #tpu.dimension_semantics<parallel>], iteration_bounds = array<i64: 2, 1>, scalar_prefetch = 0 : i64, scratch_operands = 0 : i64, tpu.core_type = #tpu.core_type<tc>, window_params = [{transform_indices = @transform_0, window_bounds = array<i64: 2, 384>}, {transform_indices = @transform_1, window_bounds = array<i64: 1, 384>}, {transform_indices = @transform_2, window_bounds = array<i64: 2, 384>}]} {
    %c0 = arith.constant 0 : index
    %c0_0 = arith.constant 0 : index
    %0 = vector.load %arg2[%c0, %c0_0] : memref<2x384xf32, #tpu.memory_space<vmem>>, vector<2x384xf32>
    %c0_1 = arith.constant 0 : index
    %c0_2 = arith.constant 0 : index
    %1 = vector.load %arg3[%c0_1, %c0_2] : memref<1x384xf32, #tpu.memory_space<vmem>>, vector<1x384xf32>
    %2 = vector.broadcast %1 : vector<1x384xf32> to vector<2x384xf32>
    %3 = arith.addf %0, %2 : vector<2x384xf32>
    %c0_3 = arith.constant 0 : index
    %c0_4 = arith.constant 0 : index
    %4 = vector.load %arg4[%c0_3, %c0_4] : memref<2x384xf32, #tpu.memory_space<vmem>>, vector<2x384xf32>
    tpu.vector_store %arg4[%c0_3, %c0_4], %3 {strides = array<i32>} : memref<2x384xf32, #tpu.memory_space<vmem>>, vector<2x384xf32>,
    return
  }
  func.func @transform_0(%arg0: i32, %arg1: i32) -> (i32, i32) {
    %c0_i32 = arith.constant 0 : i32
    return %arg1, %arg0 : i32, i32
  }
  func.func @transform_1(%arg0: i32, %arg1: i32) -> (i32, i32) {
    %c0_i32 = arith.constant 0 : i32
    %c0_i32_0 = arith.constant 0 : i32
    return %c0_i32, %arg0 : i32, i32
  }
  func.func @transform_2(%arg0: i32, %arg1: i32) -> (i32, i32) {
    %c0_i32 = arith.constant 0 : i32
    return %arg1, %arg0 : i32, i32
  }
}

</mosaic_0001>

<bundles_post_ra>
// kernel: tpu_custom_call.1
= control target key start
LH: loop header
LB: loop body
LE: loop exit
PB: predicated region body
PF: predicated region fallthrough
CT: control target
= control target key end

     0   :  { %7 = vsyncpa [#allocation3], 0  ;;  %s842_s0 = inlined_call_operand.hbm [shape: f32[2,768], index: 0, kind: input, shape index: {}]   ;;  %s843_s1 = inlined_call_operand.hbm [shape: f32[1,768], index: 1, kind: input, shape index: {}]   ;;  %s844_s2 = inlined_call_operand.hbm [shape: f32[2,768], index: 2, kind: output, shape index: {}]  }
   0x1   :  { %9 = vsyncpa [#allocation3 + $0x1], 0 }
   0x2   :  { %10 = vsyncpa [#allocation6], 0 }
   0x3   :  { %12 = vsyncpa [#allocation6 + $0x1], 0 }
   0x4   :  { %13 = vsyncpa [#allocation4], 0 }
   0x5   :  { %15 = vsyncpa [#allocation4 + $0x1], 0  ;;  %s629_s9 = smov 0   ;;  %s631_s10 = smov 0  }
   0x6   :  { %s633_s11 = smov 0   ;;  %s635_s12 = smov 0  }
   0x7   :  { %s637_s13 = smov 0   ;;  %s639_s14 = smov 0  }
   0x8 LB: > { %s377_s15 = sadd.s32 4294967295, %s608_s14   ;;  %s378_s16 = sadd.s32 4294967294, %s608_s14   ;;  %s608_s14 = sphi %s639_s14, %s21_s14   ;;  %s604_s13 = sphi %s637_s13, %s863_s13   ;;  %s600_s12 = sphi %s635_s12, %s862_s12   ;;  %s596_s11 = sphi %s633_s11, %s861_s11   ;;  %s592_s10 = sphi %s631_s10, %s860_s10   ;;  %s588_s9 = sphi %s629_s9, %s859_s9  }
   0x9   : > { %s33_s17 = sadd.s32 1, %s604_s13  ;;  %s42_s18 = sadd.s32 1, %s596_s11 }
   0xa   : > { %p35_p0 = scmp.ge.s32.totalorder %s33_s17, 2  ;;  %p49_p1 = scmp.ne.s32.totalorder %s596_s11, %s592_s10 }
   0xb   : > { %p50_p2 = scmp.eq.s32.totalorder %s608_s14, 0  ;;  %p55_p3 = scmp.ne.s32.totalorder %s592_s10, %s588_s9 }
   0xc   : > { %s865_s17 = smov (%p35_p0, %s33_s17), 0  ;;  %p56_p5 = scmp.eq.s32.totalorder %s377_s15, 0 }
   0xd   : > { %p670_p4 = por %p50_p2, %p49_p1  ;;  %s38_s20 = ssub.s32 %s604_s13, %s865_s17 }
   0xe   : > { %p107_p6 = scmp.eq.s32.totalorder %s377_s15, 1  ;;  %p40_p7 = scmp.eq.s32.totalorder %s38_s20, 0 }
   0xf   : > { %p676_p8 = por %p56_p5, %p55_p3  ;;  %p113_p10 = scmp.eq.s32.totalorder %s378_s16, 1 }
  0x10   : > { %p680_p9 = por %p107_p6, %p49_p1  ;;  %p411_p13 = scmp.lt.s32.totalorder %s608_s14, 2 }
  0x11   : > { %s848_s21 = scalar_select %p676_p8, 1, 0 }
  0x12   : > { %s849_s22 = scalar_select %p680_p9, 1, 0 }
  0x13   : > { %s685_s23 = scalar_select %p40_p7, %s596_s11, %s42_s18  }
  0x14   : > { %p687_p11 = por %p113_p10, %p55_p3  ;;  %s694_s25 = sand.u32 1, %s596_s11  }
  0x15   : > { %s390_s26 = smul.u32 6, %s694_s25  ;;  %p700_p0 = pnand %p411_p13, %p670_p4 }
  0x16   : > { %s850_s24 = scalar_select %p687_p11, 1, 0 }
  0x17   : > { %s387_s27 = smul.u32 96, %s604_s13  ;;  %s137_s4 = scalar_lea.vmem [#allocation2], %s390_s26 }
  0x18   : > { %s147_s5 = sshll.u32 %s137_s4, 4  ;;  %s134_s6 = scalar_lea.sflag [#allocation3], %s694_s25  ;;  %s710_s5 = int_to_ptr.vmem [resolvable:$true] %s147_s5 }
  0x19   : > { %s708_s3 = scalar_lea.hbm %s842_s0, %s387_s27  ;;  %p464_p3 = pneg %p700_p0 }
  0x1a   : > { %s462_s7 = scalar_lea.hbm %s708_s3, 96  ;;  %s467_s16 = scalar_lea.hbm %s842_s0, 192 }
  0x1b   : > { %p463_p2 = scmp.ne.s32.totalorder %s708_s3, %s462_s7  ;;  %p468_p6 = scmp.lt.u32.totalorder %s708_s3, %s842_s0 }
  0x1c   : > { %p469_p7 = scmp.lt.u32.totalorder %s467_s16, %s462_s7  ;;  %p471_p13 = scmp.lt.u32.totalorder %s462_s7, %s708_s3 }
  0x1d   : > { %p465_p4 = pnand %p464_p3, %p463_p2 }
  0x1e   : > { %p470_p10 = por %p469_p7, %p468_p6 }
  0x1f   : > { %p466_p5 = pneg %p465_p4 }
  0x20   : > { %p472_p12 = por %p471_p13, %p470_p10 }
  0x22   : > { %p473_p1 = pnand %p472_p12, %p466_p5 }
  0x24   : > { %476 = shalt.err (!%p473_p1)
}
  0x25   : > { %s477_s20 = scalar_lea.vmem %s710_s5, 96  ;;  %s610_s26 = smov [#allocation2]  }
  0x26   : > { %p478_p2 = scmp.ne.s32.totalorder %s710_s5, %s477_s20  ;;  %s482_s27 = sshll.u32 %s610_s26, 4  ;;  %s483_s27 = int_to_ptr.vmem [resolvable:$false] %s482_s27 }
  0x27   : > { %s484_s29 = scalar_lea.vmem %s483_s27, 192  ;;  %p485_p9 = scmp.lt.s32.totalorder %s710_s5, %s483_s27 }
  0x28   : > { %p480_p4 = pnand %p478_p2, %p464_p3  ;;  %p486_p6 = scmp.lt.s32.totalorder %s484_s29, %s477_s20 }
  0x2a   : > { %p481_p11 = pneg %p480_p4  ;;  %p487_p7 = por %p486_p6, %p485_p9 }
  0x2c   : > { %p488_p10 = pnand %p487_p7, %p481_p11 }
  0x2e   : > { %491 = shalt.err (!%p488_p10)
}
  0x2f   : > { %403 = dma.hbm_to_vmem [thread:$0]  (!%p700_p0), %s708_s3, 96, %s710_s5, %s134_s6  }
  0x30   : > { %p171_p12 = scmp.lt.s32.totalorder %s608_s14, 3  ;;  %s391_s30 = smul.u32 3, %s694_s25 }
  0x31   : > { %p852_p1 = scmp.ge.s32.totalorder %s608_s14, 1  ;;  %s388_s7 = smul.u32 48, %s604_s13 }
  0x32   : > { %s158_s18 = scalar_lea.vmem [#allocation5], %s391_s30  ;;  %s155_s3 = scalar_lea.sflag [#allocation6], %s694_s25 }
  0x33   : > { %p742_p5 = pnand %p852_p1, %p171_p12  ;;  %s750_s16 = scalar_lea.hbm %s843_s1, %s388_s7 }
  0x34   : > { %s166_s19 = sshll.u32 %s158_s18, 4  ;;  %s492_s5 = scalar_lea.hbm %s750_s16, 48  ;;  %s167_s19 = int_to_ptr.vmem [resolvable:$true] %s166_s19 }
  0x35   : > { %s853_s4 = scalar_select %p742_p5, 1, 0 }
  0x36   : > { %p493_p9 = scmp.ne.s32.totalorder %s750_s16, %s492_s5  ;;  %s497_s26 = scalar_lea.hbm %s843_s1, 96 }
  0x37   : > { %p498_p2 = scmp.lt.u32.totalorder %s750_s16, %s843_s1  ;;  %p499_p4 = scmp.lt.u32.totalorder %s497_s26, %s492_s5 }
  0x38   : > { %p495_p11 = pnand %p493_p9, %p464_p3  ;;  %p501_p7 = scmp.lt.u32.totalorder %s492_s5, %s750_s16 }
  0x39   : > { %p500_p6 = por %p499_p4, %p498_p2 }
  0x3a   : > { %p496_p13 = pneg %p495_p11 }
  0x3b   : > { %p502_p10 = por %p501_p7, %p500_p6 }
  0x3d   : > { %p503_p12 = pnand %p502_p10, %p496_p13 }
  0x3f   : > { %506 = shalt.err (!%p503_p12)
}
  0x40   : > { %s507_s25 = scalar_lea.vmem %s167_s19, 48  ;;  %s611_s30 = smov [#allocation5]  }
  0x41   : > { %p508_p1 = scmp.ne.s32.totalorder %s167_s19, %s507_s25  ;;  %s512_s7 = sshll.u32 %s611_s30, 4  ;;  %s513_s7 = int_to_ptr.vmem [resolvable:$false] %s512_s7 }
  0x42   : > { %s514_s8 = scalar_lea.vmem %s513_s7, 96  ;;  %p515_p8 = scmp.lt.s32.totalorder %s167_s19, %s513_s7 }
  0x43   : > { %p510_p9 = pnand %p508_p1, %p464_p3  ;;  %p516_p5 = scmp.lt.s32.totalorder %s514_s8, %s507_s25 }
  0x45   : > { %p511_p11 = pneg %p510_p9  ;;  %p517_p2 = por %p516_p5, %p515_p8 }
  0x47   : > { %p518_p4 = pnand %p517_p2, %p511_p11 }
  0x49   : > { %521 = shalt.err (!%p518_p4)
}
  0x4a   : > { %406 = dma.hbm_to_vmem [thread:$0]  (!%p700_p0), %s750_s16, 48, %s167_s19, %s155_s3  }
  0x4b   : > { %p854_p13 = scmp.ne.s32.totalorder %s853_s4, 0 }
  0x4c   : > { %s775_s15 = sand.u32 (!%p854_p13), 1, %s592_s10   ;;  %p855_p3 = scmp.ne.s32.totalorder (!%p854_p13), %s848_s21, 0 }
  0x4d   : > { %175 = sbr.rel (%p854_p13) target bundleno = 119 (0x77), region = 28  ;;  %s178_s5 = scalar_lea.sflag (!%p854_p13), [#allocation3], %s775_s15 }
  0x4e   : > { %s392_s18 = smul.u32 (!%p854_p13), 6, %s775_s15 }
  0x50   : > { %s181_s6 = scalar_lea.vmem (!%p854_p13), [#allocation2], %s392_s18 }
  0x54   : > { %575 = dma.done.wait (%p855_p3), %s178_s5, 96  }
  0x55   : > { %577 = vsyncadd (%p855_p3), %s178_s5, 4294967200  ;;  %s393_s28 = smul.u32 3, %s775_s15  ;;  %s187_s4 = scalar_lea.sflag [#allocation6], %s775_s15 }
  0x57   : > { %s190_s16 = scalar_lea.vmem [#allocation5], %s393_s28 }
  0x58   : > { %579 = dma.done.wait (%p855_p3), %s187_s4, 48  }
  0x59   : > { %581 = vsyncadd (%p855_p3), %s187_s4, 4294967248  ;;  %v222_v0 = vlaneseq  ;;  %v612_v1 = vmov 1983009808   ;;  %v220_v9 = vld [vmem:[%s190_s16] sm:$0x7]  ;;  %s389_s21 = smul.u32 96, %s600_s12 }
  0x5a   : > { %v236_v2 = vunpack.c.l.s4 %v612_v1  ;;  %v219_v16 = vld [vmem:[%s181_s6] sm:$0x3f]  ;;  %s215_s19 = scalar_lea.vmem [#allocation7], %s392_s18  ;;  %s254_s29 = scalar_lea.sflag [#allocation4], %s775_s15 }
  0x5b   : > { %v223_v3 = vshrl.u32 %v222_v0, 7  ;;  %s270_s3 = sshll.u32 %s215_s19, 4  ;;  %s795_s27 = scalar_lea.hbm %s844_s2, %s389_s21  ;;  %s790_s3 = int_to_ptr.vmem [resolvable:$true] %s270_s3 }
  0x5c   : > { %v237_v4 = vunpack.c.0.s8 %v236_v2  ;;  %s522_s25 = scalar_lea.vmem %s790_s3, 96  ;;  %p856_p0 = scmp.ne.s32.totalorder %s849_s22, 0 }
  0x5d   : > { %v224_v5 = vsub.s32 0, %v223_v3  ;;  %v228_v6 = vsub.s32 1, %v223_v3  ;;  %v232_v7 = vsub.s32 2, %v223_v3  ;;  %p523_p8 = scmp.ne.s32.totalorder %s790_s3, %s522_s25  ;;  %s613_s12 = smov [#allocation7]  }
  0x5e   : > { %v240_v8 = vsub.s32 %v237_v4, %v223_v3  ;;  %s526_s30 = sshll.u32 %s613_s12, 4  ;;  %s527_s30 = int_to_ptr.vmem [resolvable:$false] %s526_s30 }
  0x5f   : > { %v225_v10 = vrot.slane %v220_v9, %v224_v5  ;;  %v229_v11 = vrot.slane %v220_v9, %v228_v6  ;;  %v233_v12 = vrot.slane %v220_v9, %v232_v7  ;;  %p524_p5 = pnand %p523_p8, %p856_p0  ;;  %s528_s7 = scalar_lea.vmem %s527_s30, 192 }
  0x60   : > { %p529_p7 = scmp.lt.s32.totalorder %s790_s3, %s527_s30  ;;  %p530_p10 = scmp.lt.s32.totalorder %s528_s7, %s522_s25 }
  0x61   : > { %v234_v13 = vcombine.low %v225_v10, %v229_v11  ;;  %v248_v14 = vrot.slane %v233_v12, %v240_v8  ;;  %p525_p6 = pneg %p524_p5 }
  0x62   : > { %p531_p12 = por %p530_p10, %p529_p7 }
  0x63   : > { %v241_v15 = vrot.slane %v234_v13, %v240_v8 }
  0x64   : > { %p532_p1 = pnand %p531_p12, %p525_p6 }
  0x65   : > { %v249_v17 = vcombine.low %v241_v15, %v248_v14 }
  0x67   : > { %v251_v18 = vadd.f32 %v249_v17, %v219_v16 }
  0x69   : > { %252 = vst [vmem:[%s215_s19] sm:$0x3f] %v251_v18 }
  0x6a   : > { %535 = shalt.err (!%p532_p1)
}
  0x6b   : > { %s536_s8 = scalar_lea.hbm %s795_s27, 96  ;;  %s540_s5 = scalar_lea.hbm %s844_s2, 192 }
  0x6c   : > { %p537_p9 = scmp.ne.s32.totalorder %s795_s27, %s536_s8  ;;  %p541_p4 = scmp.lt.u32.totalorder %s795_s27, %s844_s2 }
  0x6d   : > { %p542_p13 = scmp.lt.u32.totalorder %s540_s5, %s536_s8  ;;  %p544_p8 = scmp.lt.u32.totalorder %s536_s8, %s795_s27 }
  0x6e   : > { %p538_p11 = pnand %p537_p9, %p856_p0 }
  0x6f   : > { %p543_p3 = por %p542_p13, %p541_p4 }
  0x70   : > { %p539_p2 = pneg %p538_p11 }
  0x71   : > { %p545_p5 = por %p544_p8, %p543_p3 }
  0x73   : > { %p546_p6 = pnand %p545_p5, %p539_p2 }
  0x75   : > { %549 = shalt.err (!%p546_p6)
}
  0x76   : > { %398 = dma.vmem_to_hbm [thread:$0]  (%p856_p0), %s790_s3, 96, %s795_s27, %s254_s29  }
  0x77 PF: > { %s282_s4 = sand.u32 1, %s588_s9   ;;  %p857_p7 = scmp.ne.s32.totalorder %s850_s24, 0 }
  0x78   : > { %p858_p10 = scmp.ge.s32.totalorder %s608_s14, 2  ;;  %s283_s16 = scalar_lea.sflag [#allocation4], %s282_s4 }
  0x7a   : > { %p408_p12 = pnand %p858_p10, %p857_p7 }
  0x7c   : > { %583 = dma.done.wait (!%p408_p12), %s283_s16, 96  }
  0x7d   : > { %585 = vsyncadd (!%p408_p12), %s283_s16, 4294967200  ;;  %s21_s14 = sadd.s32 1, %s608_s14   ;;  %s859_s9 = smov %s592_s10 }
  0x7e   : > { %p18_p1 = scmp.ge.s32.totalorder %s21_s14, 4   ;;  %s860_s10 = smov %s596_s11 }
  0x7f   : > { %s861_s11 = smov %s685_s23  ;;  %s862_s12 = smov %s604_s13 }
  0x80   : > { %s863_s13 = smov %s865_s17  ;;  %20 = sbr.rel (!%p18_p1) target bundleno = 8 (0x8), region = 86 }
  0x87   :  { %288 = vsyncpa [#allocation3], 1 }
  0x88   :  { %290 = vsyncpa [#allocation3 + $0x1], 1 }
  0x89   :  { %291 = vsyncpa [#allocation6], 1 }
  0x8a   :  { %293 = vsyncpa [#allocation6 + $0x1], 1 }
  0x8b   :  { %294 = vsyncpa [#allocation4], 1 }
  0x8c   :  { %296 = vsyncpa [#allocation4 + $0x1], 1 }

</bundles_post_ra>
